<compile_context>
chip_gen: v7x
topology: tpu7x:2x2x1
jax: 0.10.0
libtpu: 0.0.40
codegen_flags: <defaults>
</compile_context>

<pallas_src>
import jax
import jax.numpy as jnp
from jax import lax
from jax.experimental import pallas as pl
from jax.experimental.pallas import tpu as pltpu


def _linear_sigmoid_kernel(w_ref, b_ref, x_ref, o_ref):
    # w_ref : SMEM (4,)  row-major flatten of W (OUT=2, IN=2): [w00, w01, w10, w11]
    # b_ref : SMEM (2,)
    # x_ref : VMEM (TS, TL) interleaved-lane view of x: even lanes = feature 0,
    #                       odd lanes = feature 1.
    # o_ref : VMEM (TS, TL) same interleaving for the two output channels.
    x = x_ref[...]
    ts, tl = x.shape

    # Even/odd lane mask built as a (1, TL) row; broadcast over sublanes is free.
    lane = lax.broadcasted_iota(jnp.int32, (1, tl), 1)
    even = (lane % 2) == 0

    # Partner value: lane l needs the value at lane l ^ 1.  Two static lane
    # rotations (XLU) + one select; the wrap-around lanes are never selected
    # because TL is even.
    partner = jnp.where(
        even,
        pltpu.roll(x, tl - 1, 1),   # result[l] = x[l + 1]  (used on even lanes)
        pltpu.roll(x, 1, 1),        # result[l] = x[l - 1]  (used on odd lanes)
    )

    # Per-lane coefficients: scalars from SMEM splatted into a (1, TL) row.
    w_self = jnp.where(even, w_ref[0], w_ref[3])   # even: W[0,0], odd: W[1,1]
    w_part = jnp.where(even, w_ref[1], w_ref[2])   # even: W[0,1], odd: W[1,0]
    bias = jnp.where(even, b_ref[0], b_ref[1])

    z = x * w_self + partner * w_part + bias
    # sigmoid(z) = 0.5 * tanh(z / 2) + 0.5  — one EUP push per element, exact.
    o_ref[...] = 0.5 * jnp.tanh(0.5 * z) + 0.5


def net_forward(x, w, b, *, lane_tile=1024, tile_bytes=2 << 20):
    """Forward of Net: sigmoid(x @ W^T + b), nn.Linear(2, 2) semantics.

    x: (B, 2) f32, w: (2, 2) f32 (torch nn.Linear layout), b: (2,) f32 -> (B, 2) f32.
    """
    B, IN = x.shape
    OUT, IN_w = w.shape
    assert IN == 2 and IN_w == 2 and OUT == 2 and b.shape == (OUT,)

    x = jnp.asarray(x, jnp.float32)
    w_flat = jnp.asarray(w, jnp.float32).reshape(-1)    # (4,) row-major
    bias = jnp.asarray(b, jnp.float32)                  # (2,)

    # ---- interleaved-lane packing -------------------------------------------
    # flat[2r + f] = x[r, f]; viewed as (rows, TL) with TL even, lane parity is
    # the feature index.  No transposes; the output unpacks the same way since
    # OUT == IN == 2.
    total = B * IN
    if total >= lane_tile:
        tl = lane_tile
    else:
        tl = max(128, ((total + 127) // 128) * 128)
    rows = -(-total // tl)
    padded_total = rows * tl

    xf = x.reshape(-1)
    if padded_total != total:
        # Only the tail of the last lane-row needs padding (< TL elements).
        xf = jnp.pad(xf, (0, padded_total - total))
    xp = xf.reshape(rows, tl)

    # ---- batch (sublane) tiling ----------------------------------------------
    # ~tile_bytes per input block amortizes per-grid-step overhead; keep >= 2
    # blocks when there is enough work so the "parallel" grid axis can be
    # sharded across v7x's two TensorCores.  Ragged last block is fine: OOB
    # reads are discarded by the final slice, OOB writes are dropped.
    if rows <= 16:
        ts = rows
        n_blocks = 1
    else:
        vmem_ts = max(8, (tile_bytes // (tl * 4)) // 8 * 8)
        half_ts = max(8, ((-(-rows // 2)) // 8) * 8)
        ts = min(vmem_ts, half_ts)
        n_blocks = -(-rows // ts)

    yp = pl.pallas_call(
        _linear_sigmoid_kernel,
        out_shape=jax.ShapeDtypeStruct((rows, tl), jnp.float32),
        grid_spec=pl.GridSpec(
            grid=(n_blocks,),
            in_specs=[
                pl.BlockSpec(memory_space=pltpu.MemorySpace.SMEM),   # weights (4,)
                pl.BlockSpec(memory_space=pltpu.MemorySpace.SMEM),   # bias    (2,)
                pl.BlockSpec((ts, tl), lambda i: (i, 0)),            # packed x tile
            ],
            out_specs=pl.BlockSpec((ts, tl), lambda i: (i, 0)),      # packed y tile
        ),
        compiler_params=pltpu.CompilerParams(
            dimension_semantics=("parallel",),
        ),
    )(w_flat, bias, xp)

    # Unpack: same interleaving as the input (OUT == IN == 2).
    return yp.reshape(-1)[:total].reshape(B, OUT)


if __name__ == "__main__":
    key = jax.random.PRNGKey(0)
    kx, kw, kb, kx2 = jax.random.split(key, 4)

    B, IN, OUT = 8, 2, 2
    x = jax.random.normal(kx, (B, IN), dtype=jnp.float32)

    # Parameter init mimicking nn.Linear's uniform(-1/sqrt(in), 1/sqrt(in))
    bound = 1.0 / jnp.sqrt(jnp.float32(IN))
    w = jax.random.uniform(kw, (OUT, IN), dtype=jnp.float32, minval=-bound, maxval=bound)
    b = jax.random.uniform(kb, (OUT,), dtype=jnp.float32, minval=-bound, maxval=bound)

    y = net_forward(x, w, b)
    jax.block_until_ready(y)
    y_ref = jax.nn.sigmoid(x @ w.T + b)
    assert y.shape == (B, OUT)
    assert jnp.allclose(y, y_ref, atol=1e-4, rtol=1e-4), "mismatch vs reference (small batch)"

    # Multi-block path: forces several grid steps, a ragged last block, and the
    # tail-padding branch (small lane_tile keeps shapes modest for the test).
    B2 = 5000
    x2 = jax.random.normal(kx2, (B2, IN), dtype=jnp.float32)
    y2 = net_forward(x2, w, b, lane_tile=256)
    jax.block_until_ready(y2)
    y2_ref = jax.nn.sigmoid(x2 @ w.T + b)
    assert y2.shape == (B2, OUT)
    assert jnp.allclose(y2, y2_ref, atol=1e-4, rtol=1e-4), "mismatch vs reference (tiled batch)"

    print("KERNEL_OK")
</pallas_src>

<mosaic_0001>
module attributes {stable_mosaic.version = 11 : i64} {
  func.func @_linear_sigmoid_kernel(%arg0: i32, %arg1: memref<4xf32, #tpu.memory_space<smem>>, %arg2: memref<2xf32, #tpu.memory_space<smem>>, %arg3: memref<1x128xf32, #tpu.memory_space<vmem>>, %arg4: memref<1x128xf32, #tpu.memory_space<vmem>>) attributes {dimension_semantics = [#tpu.dimension_semantics<parallel>], iteration_bounds = array<i64: 1>, scalar_prefetch = 0 : i64, scratch_operands = 0 : i64, tpu.core_type = #tpu.core_type<tc>, window_params = [{transform_indices = @transform_0, window_bounds = array<i64: 4>}, {transform_indices = @transform_1, window_bounds = array<i64: 2>}, {transform_indices = @transform_2, window_bounds = array<i64: 1, 128>}, {transform_indices = @transform_3, window_bounds = array<i64: 1, 128>}]} {
    %c0 = arith.constant 0 : index
    %c0_0 = arith.constant 0 : index
    %0 = vector.load %arg3[%c0, %c0_0] : memref<1x128xf32, #tpu.memory_space<vmem>>, vector<1x128xf32>
    %1 = tpu.iota {dimensions = array<i32: 1>} : vector<1x128xi32>
    %c2_i32 = arith.constant 2 : i32
    %c0_i32 = arith.constant 0 : i32
    %2 = arith.cmpi eq, %c2_i32, %c0_i32 : i32
    %c1_i32 = arith.constant 1 : i32
    %3 = arith.select %2, %c1_i32, %c2_i32 : i32
    %4 = vector.broadcast %3 : i32 to vector<1x128xi32>
    %5 = arith.remsi %1, %4 : vector<1x128xi32>
    %c0_i32_1 = arith.constant 0 : i32
    %6 = vector.broadcast %c0_i32_1 : i32 to vector<1x128xi32>
    %7 = arith.cmpi ne, %5, %6 : vector<1x128xi32>
    %c0_i32_2 = arith.constant 0 : i32
    %8 = vector.broadcast %c0_i32_2 : i32 to vector<1x128xi32>
    %9 = arith.cmpi slt, %5, %8 : vector<1x128xi32>
    %c0_i32_3 = arith.constant 0 : i32
    %10 = arith.cmpi slt, %3, %c0_i32_3 : i32
    %11 = vector.broadcast %10 : i1 to vector<1x128xi1>
    %12 = vector.broadcast %11 : vector<1x128xi1> to vector<1x128xi1>
    %13 = arith.xori %9, %12 : vector<1x128xi1>
    %14 = arith.andi %13, %7 : vector<1x128xi1>
    %15 = vector.broadcast %3 : i32 to vector<1x128xi32>
    %16 = arith.addi %5, %15 : vector<1x128xi32>
    %17 = arith.select %14, %16, %5 : vector<1x128xi1>, vector<1x128xi32>
    %c0_i32_4 = arith.constant 0 : i32
    %18 = vector.broadcast %c0_i32_4 : i32 to vector<1x128xi32>
    %19 = arith.cmpi eq, %17, %18 : vector<1x128xi32>
    %c127_i32 = arith.constant 127 : i32
    %20 = tpu.dynamic_rotate %0 by %c127_i32 dim 1 : vector<1x128xf32>, i32 -> vector<1x128xf32>
    %c1_i32_5 = arith.constant 1 : i32
    %21 = tpu.dynamic_rotate %0 by %c1_i32_5 dim 1 : vector<1x128xf32>, i32 -> vector<1x128xf32>
    %22 = arith.select %19, %20, %21 : vector<1x128xi1>, vector<1x128xf32>
    %c0_6 = arith.constant 0 : index
    %23 = memref.load %arg1[%c0_6] : memref<4xf32, #tpu.memory_space<smem>>
    %c3 = arith.constant 3 : index
    %24 = memref.load %arg1[%c3] : memref<4xf32, #tpu.memory_space<smem>>
    %25 = vector.broadcast %23 : f32 to vector<1x128xf32>
    %26 = vector.broadcast %24 : f32 to vector<1x128xf32>
    %27 = arith.select %19, %25, %26 : vector<1x128xi1>, vector<1x128xf32>
    %c1 = arith.constant 1 : index
    %28 = memref.load %arg1[%c1] : memref<4xf32, #tpu.memory_space<smem>>
    %c2 = arith.constant 2 : index
    %29 = memref.load %arg1[%c2] : memref<4xf32, #tpu.memory_space<smem>>
    %30 = vector.broadcast %28 : f32 to vector<1x128xf32>
    %31 = vector.broadcast %29 : f32 to vector<1x128xf32>
    %32 = arith.select %19, %30, %31 : vector<1x128xi1>, vector<1x128xf32>
    %c0_7 = arith.constant 0 : index
    %33 = memref.load %arg2[%c0_7] : memref<2xf32, #tpu.memory_space<smem>>
    %c1_8 = arith.constant 1 : index
    %34 = memref.load %arg2[%c1_8] : memref<2xf32, #tpu.memory_space<smem>>
    %35 = vector.broadcast %33 : f32 to vector<1x128xf32>
    %36 = vector.broadcast %34 : f32 to vector<1x128xf32>
    %37 = arith.select %19, %35, %36 : vector<1x128xi1>, vector<1x128xf32>
    %38 = arith.mulf %0, %27 : vector<1x128xf32>
    %39 = arith.mulf %22, %32 : vector<1x128xf32>
    %40 = arith.addf %38, %39 : vector<1x128xf32>
    %41 = arith.addf %40, %37 : vector<1x128xf32>
    %cst = arith.constant 5.000000e-01 : f32
    %42 = vector.broadcast %cst : f32 to vector<1x128xf32>
    %43 = arith.mulf %42, %41 : vector<1x128xf32>
    %44 = math.tanh %43 : vector<1x128xf32>
    %cst_9 = arith.constant 5.000000e-01 : f32
    %45 = vector.broadcast %cst_9 : f32 to vector<1x128xf32>
    %46 = arith.mulf %45, %44 : vector<1x128xf32>
    %cst_10 = arith.constant 5.000000e-01 : f32
    %47 = vector.broadcast %cst_10 : f32 to vector<1x128xf32>
    %48 = arith.addf %46, %47 : vector<1x128xf32>
    %c0_11 = arith.constant 0 : index
    %c0_12 = arith.constant 0 : index
    %49 = vector.load %arg4[%c0_11, %c0_12] : memref<1x128xf32, #tpu.memory_space<vmem>>, vector<1x128xf32>
    tpu.vector_store %arg4[%c0_11, %c0_12], %48 {strides = array<i32>} : memref<1x128xf32, #tpu.memory_space<vmem>>, vector<1x128xf32>,
    return
  }
  func.func @transform_0(%arg0: i32) -> i32 {
    %c0_i32 = arith.constant 0 : i32
    %c0_i32_0 = arith.constant 0 : i32
    return %c0_i32 : i32
  }
  func.func @transform_1(%arg0: i32) -> i32 {
    %c0_i32 = arith.constant 0 : i32
    %c0_i32_0 = arith.constant 0 : i32
    return %c0_i32 : i32
  }
  func.func @transform_2(%arg0: i32) -> (i32, i32) {
    %c0_i32 = arith.constant 0 : i32
    %c0_i32_0 = arith.constant 0 : i32
    return %arg0, %c0_i32 : i32, i32
  }
  func.func @transform_3(%arg0: i32) -> (i32, i32) {
    %c0_i32 = arith.constant 0 : i32
    %c0_i32_0 = arith.constant 0 : i32
    return %arg0, %c0_i32 : i32, i32
  }
}

</mosaic_0001>

<bundles_post_ra>
// kernel: tpu_custom_call.1
= control target key start
LH: loop header
LB: loop body
LE: loop exit
PB: predicated region body
PF: predicated region fallthrough
CT: control target
= control target key end

     0   :  { %8 = vsyncpa [#allocation4], 0  ;;  %s215_s0 = inlined_call_operand.hbm [shape: f32[4], index: 0, kind: input, shape index: {}]   ;;  %s216_s1 = inlined_call_operand.vmem [shape: f32[2], index: 1, kind: input, shape index: {}]   ;;  %s217_s2 = inlined_call_operand.vmem [shape: f32[1,128], index: 2, kind: input, shape index: {}]   ;;  %s218_s3 = inlined_call_operand.hbm [shape: f32[1,128], index: 3, kind: output, shape index: {}]  }
   0x1   :  { %9 = vsyncpa [#allocation5], 0 }
   0x2   :  { %10 = vsyncpa [#allocation3], 0  ;;  %s25_s14 = sshll.u32 %s216_s1, 4  ;;  %s110_s17 = scalar_lea.hbm %s215_s0, 16  ;;  %s26_s14 = int_to_ptr.vmem [resolvable:$true] %s25_s14 }
   0x3   :  { %p111_p0 = scmp.ne.s32.totalorder %s215_s0, %s110_s17  ;;  %p114_p1 = scmp.lt.u32.totalorder %s110_s17, %s215_s0 }
   0x5   :  { %p116_p2 = pnand %p114_p1, %p111_p0 }
   0x7   :  { %119 = shalt.err (!%p116_p2)
}
   0x8   :  { %s160_s22 = smov [#allocation2]   ;;  %s120_s1 = scalar_lea.vmem %s26_s14, 16 }
   0x9   :  { %18 = dma.hbm_to_smem %s215_s0, 16, %s160_s22, [#allocation4]  }
   0xa   :  { %p121_p3 = scmp.ne.s32.totalorder %s26_s14, %s120_s1  ;;  %p125_p4 = scmp.lt.s32.totalorder %s26_s14, %s26_s14 }
   0xb   :  { %p126_p5 = scmp.lt.s32.totalorder %s120_s1, %s120_s1 }
   0xd   :  { %p127_p6 = por %p126_p5, %p125_p4 }
   0xf   :  { %p128_p7 = pnand %p127_p6, %p121_p3 }
  0x11   :  { %131 = shalt.err (!%p128_p7)
}
  0x12   :  { %s161_s25 = smov [#allocation6]  }
  0x13   :  { %28 = dma.vmem_to_smem %s26_s14, 16, %s161_s25, [#allocation5]  }
  0x14   :  { %154 = dma.done.wait [#allocation4], 16  }
  0x15   :  { %155 = vsyncadd [#allocation4], 4294967280 }
  0x16   :  { %156 = dma.done.wait [#allocation5], 16  }
  0x17   :  { %157 = vsyncadd [#allocation5], 4294967280 }
  0x18   :  { %37 = sfence }
  0x19   :  { %v38_v0 = vld [vmem:[%s217_s2] sm:$0x1]  ;;  %s162_s0 = smov 127   ;;  %s163_s28 = smov 1   ;;  %v39_v1 = vlaneseq }
  0x1a   :  { %54 = vrot.lane.b32.xlu0 %v38_v0, %s162_s0  ;;  %s59_s29 = sld [smem:[#allocation2]]  ;;  %s99_s30 = sld [smem:[#allocation2 + $0x3]] }
  0x1b   :  { %v40_v2 = vand.u32 127, %v39_v1  ;;  %s100_s4 = sld [smem:[#allocation2 + $0x1]]  ;;  %s101_s5 = sld [smem:[#allocation2 + $0x2]] }
  0x1c   :  { %s69_s6 = sld [smem:[#allocation6]]  ;;  %s102_s7 = sld [smem:[#allocation6 + $0x1]] }
  0x1d   :  { %v45_v3 = vand.u32 1, %v40_v2  ;;  %s164_s2 = smov [#allocation7]  }
  0x1e   :  { %56 = vrot.lane.b32.xlu0 %v38_v0, %s163_s28  ;;  %s89_s8 = sshll.u32 %s164_s2, 4  ;;  %s90_s8 = int_to_ptr.vmem [resolvable:$true] %s89_s8 }
  0x1f   :  { %vm53_vm0 = vcmp.eq.s32.totalorder %v45_v3, 0  ;;  %s132_s9 = scalar_lea.vmem %s90_s8, 16  ;;  %s136_s10 = scalar_lea.vmem %s90_s8, 32 }
  0x20   :  { %v61_v4 = vstv %s59_s29  ;;  %v62_v5 = vstv %s99_s30  ;;  %p133_p8 = scmp.ne.s32.totalorder %s90_s8, %s132_s9  ;;  %p137_p9 = scmp.lt.s32.totalorder %s90_s8, %s90_s8 }
  0x21   :  { %v66_v7 = vstv %s100_s4  ;;  %v67_v8 = vstv %s101_s5  ;;  %v63_v9 = vsel %vm53_vm0, %v61_v4, %v62_v5  ;;  %p138_p10 = scmp.lt.s32.totalorder %s136_s10, %s132_s9 }
  0x22   :  { %v68_v10 = vsel %vm53_vm0, %v66_v7, %v67_v8  ;;  %v74_v11 = vmul.f32 %v63_v9, %v38_v0  ;;  %v71_v13 = vstv %s69_s6  ;;  %v72_v14 = vstv %s102_s7 }
  0x23   :  { %v73_v17 = vsel %vm53_vm0, %v71_v13, %v72_v14  ;;  %p139_p11 = por %p138_p10, %p137_p9 }
  0x25   :  { %p140_p12 = pnand %p139_p11, %p133_p8 }
  0x8c   :  { %v55_v6 = vpop.permute.xlu0 %54 }
  0x90   :  { %v57_v12 = vpop.permute.xlu0 %56 }
  0x91   :  { %v58_v15 = vsel %vm53_vm0, %v55_v6, %v57_v12 }
  0x92   :  { %v75_v16 = vmul.f32 %v68_v10, %v58_v15 }
  0x94   :  { %v76_v18 = vadd.f32 %v75_v16, %v74_v11 }
  0x96   :  { %v77_v19 = vadd.f32 %v76_v18, %v73_v17 }
  0x98   :  { %v78_v20 = vmul.f32 0.5, %v77_v19 }
  0x9a   :  { %108 = vtanh.f32 %v78_v20 }
  0xa4   :  { %v109_v21 = vpop.eup %108 }
  0xa5   :  { %v80_v22 = vmul.f32 0.5, %v109_v21 }
  0xa7   :  { %v81_v23 = vadd.f32 0.5, %v80_v22 }
  0xa9   :  { %82 = vst [vmem:[#allocation7] sm:$0x1] %v81_v23 }
  0xaa   :  { %143 = shalt.err (!%p140_p12)
}
  0xab   :  { %s144_s13 = scalar_lea.hbm %s218_s3, 16 }
  0xac   :  { %p145_p13 = scmp.ne.s32.totalorder %s218_s3, %s144_s13  ;;  %p148_p0 = scmp.lt.u32.totalorder %s144_s13, %s218_s3 }
  0xae   :  { %p150_p1 = pnand %p148_p0, %p145_p13 }
  0xb0   :  { %153 = shalt.err (!%p150_p1)
}
  0xb1   :  { %92 = dma.vmem_to_hbm [thread:$0]  %s90_s8, 16, %s218_s3, [#allocation3]  }
  0xb2   :  { %158 = dma.done.wait [#allocation3], 16  }
  0xb3   :  { %159 = vsyncadd [#allocation3], 4294967280 }
  0xb4   :  { %96 = vsyncpa [#allocation3], 1 }
  0xb5   :  { %97 = vsyncpa [#allocation4], 1 }
  0xb6   :  { %98 = vsyncpa [#allocation5], 1 }

</bundles_post_ra>
